<compile_context>
chip_gen: v6e
topology: v6e:2x2x1
jax: 0.10.0
libtpu: 0.0.40
codegen_flags: <defaults>
</compile_context>

<pallas_src>
import jax
import jax.numpy as jnp
from jax import lax
from jax.experimental import pallas as pl
from jax.experimental.pallas import tpu as pltpu

_LANES = 128
_SUBLANES = 8
_MIN_TILE_ROWS = 16                      # bf16-safe sublane packing
_CHUNK_ROWS = 16                         # rows accumulated per inner loop step
_PAD_ELEMS = _MIN_TILE_ROWS * _LANES     # ragged inputs pad to this granularity


def _round_up(x, m):
    return (x + m - 1) // m * m


def _tpu_vmem_capacity_bytes():
    try:
        info = pltpu.get_tpu_info()
        cap = getattr(info, "vmem_capacity_bytes", None)
        if cap:
            return int(cap)
    except Exception:
        pass
    return 64 << 20  # conservative default (v7x-sized VMEM)


def _make_kernel(n_preds, tile_rows):
    inv_n = 1.0 / n_preds
    n_chunks = tile_rows // _CHUNK_ROWS
    tile_elems = tile_rows * _LANES
    unroll = (8 if n_chunks % 8 == 0 else
              4 if n_chunks % 4 == 0 else
              2 if n_chunks % 2 == 0 else 1)

    def kernel(nvalid_ref, y_ref, *rest):
        pred_refs = rest[:n_preds]
        out_ref = rest[n_preds]

        n_valid = nvalid_ref[0]
        tile_start = pl.program_id(0) * tile_elems

        def bce(x, y):
            # Numerically-stable BCE-with-logits (same form as torch):
            #   max(x, 0) - x*y + log(1 + exp(-|x|))
            # TODO(synk): if the v7x EUP slot saturates (2 transcendentals/elem
            # vs 3.2 TB/s HBM), switch exp/log to bf16 or a polynomial softplus.
            return (jnp.maximum(x, 0.0) - x * y
                    + jnp.log(1.0 + jnp.exp(-jnp.abs(x))))

        def chunk_loss(c):
            off = pl.multiple_of(c * _CHUNK_ROWS, _CHUNK_ROWS)
            # Upcast right after the (native-dtype) load: keeps HBM/VMEM traffic
            # narrow but all arithmetic in f32 (v5e has no bf16 VPU/EUP).
            y = y_ref[pl.ds(off, _CHUNK_ROWS), :].astype(jnp.float32)
            total = jnp.zeros((_CHUNK_ROWS, _LANES), jnp.float32)
            for j in range(n_preds):                 # static: n_preds is small
                w = 1.0 if j == n_preds - 1 else inv_n
                x = pred_refs[j][pl.ds(off, _CHUNK_ROWS), :].astype(jnp.float32)
                total = total + w * bce(x, y)
            return total

        def run(masked):
            if masked:
                # Flat-index offsets of one chunk; hoisted out of the loop
                # (broadcast_in_dim is not CSE'd by JAX).
                offs = (lax.broadcasted_iota(jnp.int32,
                                             (_CHUNK_ROWS, _LANES), 0) * _LANES
                        + lax.broadcasted_iota(jnp.int32,
                                               (_CHUNK_ROWS, _LANES), 1))

            def step(c, acc):
                total = chunk_loss(c)
                if masked:
                    flat = tile_start + c * (_CHUNK_ROWS * _LANES) + offs
                    total = jnp.where(flat < n_valid, total, 0.0)
                # Fold (16,128) -> (8,128): layout-preserving reshape + one
                # vreg add on the VPU; no cross-lane reduce in the hot loop.
                folded = jnp.sum(
                    total.reshape(_CHUNK_ROWS // _SUBLANES, _SUBLANES, _LANES),
                    axis=0)
                return acc + folded

            acc0 = jnp.zeros((_SUBLANES, _LANES), jnp.float32)
            out_ref[...] = lax.fori_loop(0, n_chunks, step, acc0, unroll=unroll)

        # Only the tile containing the n_valid boundary pays for masking.
        is_full = (tile_start + tile_elems) <= n_valid

        @pl.when(is_full)
        def _():
            run(masked=False)

        @pl.when(jnp.logical_not(is_full))
        def _():
            run(masked=True)

    return kernel


def serial_connected_loss(predict_list, label):
    """Pallas implementation of SerialConnectedLoss.forward."""
    n_preds = len(predict_list)
    assert n_preds >= 1
    n_valid = int(label.size)
    assert all(int(p.size) == n_valid for p in predict_list)

    def to_2d(x):
        if not jnp.issubdtype(x.dtype, jnp.floating):
            x = x.astype(jnp.float32)
        flat = jnp.ravel(x)                  # contiguous -> free reshape
        pad = (-n_valid) % _PAD_ELEMS
        if pad:
            # TODO(synk): a fully copy-free ragged path needs 1-D blocks; this
            # pad only triggers when numel % 2048 != 0, and the in-kernel mask
            # makes the pad value semantically irrelevant.
            flat = jnp.pad(flat, (0, pad))
        return flat.reshape(-1, _LANES)

    label2d = to_2d(label)
    preds2d = [to_2d(p) for p in predict_list]
    rows = label2d.shape[0]                  # always a multiple of 16

    # ---- Generation-aware tile sizing ------------------------------------
    vmem_cap = _tpu_vmem_capacity_bytes()
    if vmem_cap >= (128 << 20):              # v5e / v6e: big VMEM, big tiles
        tile_budget, max_tile_rows = 48 << 20, 8192
    else:                                    # v7x-sized VMEM: conservative
        tile_budget, max_tile_rows = 20 << 20, 2048

    in_dtypes = [label2d.dtype] + [p.dtype for p in preds2d]
    bytes_per_row_2buf = sum(2 * _LANES * jnp.dtype(d).itemsize
                             for d in in_dtypes)
    cap_rows = max(_MIN_TILE_ROWS,
                   (tile_budget // bytes_per_row_2buf)
                   // _MIN_TILE_ROWS * _MIN_TILE_ROWS)
    max_tr = min(max_tile_rows, cap_rows)

    n_tiles = pl.cdiv(rows, max_tr)
    # Guarantee >= 2 grid steps so the "parallel" axis can split across the
    # two v7x TensorCores (one extra ~0.35us step elsewhere).
    if n_tiles == 1 and rows > 2 * _MIN_TILE_ROWS:
        n_tiles = 2
    tile_rows = min(max_tr,
                    _round_up(pl.cdiv(rows, n_tiles), _MIN_TILE_ROWS))
    n_tiles = pl.cdiv(rows, tile_rows)

    # Double-buffered input tiles + headroom for out blocks / temporaries.
    vmem_needed = (sum(2 * tile_rows * _LANES * jnp.dtype(d).itemsize
                       for d in in_dtypes) + (8 << 20))
    vmem_limit = int(min(max(vmem_needed, 32 << 20), vmem_cap - (8 << 20)))

    kernel = _make_kernel(n_preds, tile_rows)
    tile_spec = pl.BlockSpec((tile_rows, _LANES), lambda rt, nv: (rt, 0))
    grid_spec = pltpu.PrefetchScalarGridSpec(
        num_scalar_prefetch=1,
        grid=(n_tiles,),
        in_specs=[tile_spec] * (n_preds + 1),
        out_specs=pl.BlockSpec((None, _SUBLANES, _LANES),
                               lambda rt, nv: (rt, 0, 0)),
    )

    partials = pl.pallas_call(
        kernel,
        out_shape=jax.ShapeDtypeStruct((n_tiles, _SUBLANES, _LANES),
                                       jnp.float32),
        grid_spec=grid_spec,
        compiler_params=pltpu.CompilerParams(
            dimension_semantics=("parallel",),
            vmem_limit_bytes=vmem_limit,
        ),
    )(jnp.array([n_valid], dtype=jnp.int32), label2d, *preds2d)

    # Tiny lane-dense partial reduction + mean normalization in the wrapper.
    return jnp.sum(partials) / n_valid


def _reference_loss(predict_list, label):
    """Pure-JAX reference mirroring the PyTorch module."""
    n = len(predict_list)
    y = label.astype(jnp.float32)

    def bce_mean(x):
        x = x.astype(jnp.float32)
        per = jnp.maximum(x, 0.0) - x * y + jnp.log1p(jnp.exp(-jnp.abs(x)))
        return jnp.mean(per)

    total = 0.0
    for idx, p in enumerate(predict_list):
        w = 1.0 if idx == n - 1 else 1.0 / n
        total = total + w * bce_mean(p)
    return total


if __name__ == "__main__":
    key = jax.random.PRNGKey(0)
    ks = jax.random.split(key, 10)

    # Primary: segmentation-style head, NCHW = (2, 4, 16, 16), 3 serial outputs.
    shape = (2, 4, 16, 16)
    predict_list = [jax.random.normal(ks[i], shape, dtype=jnp.float32)
                    for i in range(3)]
    label = (jax.random.uniform(ks[3], shape) > 0.5).astype(jnp.float32)
    loss = jax.block_until_ready(serial_connected_loss(predict_list, label))
    ref = _reference_loss(predict_list, label)
    assert jnp.allclose(loss, ref, rtol=1e-5, atol=1e-6), (loss, ref)

    # Ragged element count: exercises scalar-prefetch + in-kernel boundary mask.
    shape2 = (1, 3, 10, 10)
    preds2 = [jax.random.normal(ks[4], shape2, dtype=jnp.float32),
              jax.random.normal(ks[5], shape2, dtype=jnp.float32)]
    label2 = (jax.random.uniform(ks[6], shape2) > 0.5).astype(jnp.float32)
    loss2 = jax.block_until_ready(serial_connected_loss(preds2, label2))
    ref2 = _reference_loss(preds2, label2)
    assert jnp.allclose(loss2, ref2, rtol=1e-5, atol=1e-6), (loss2, ref2)

    # Multi-tile grid + native bf16 streaming (upcast happens inside the kernel).
    shape3 = (2, 4, 32, 32)
    preds3 = [jax.random.normal(ks[7], shape3).astype(jnp.bfloat16),
              jax.random.normal(ks[8], shape3).astype(jnp.bfloat16)]
    label3 = (jax.random.uniform(ks[9], shape3) > 0.5).astype(jnp.float32)
    loss3 = jax.block_until_ready(serial_connected_loss(preds3, label3))
    ref3 = _reference_loss(preds3, label3)
    assert jnp.allclose(loss3, ref3, rtol=1e-4, atol=1e-5), (loss3, ref3)

    print("KERNEL_OK")
</pallas_src>

<mosaic_0001>
module attributes {stable_mosaic.version = 11 : i64} {
  func.func @kernel(%arg0: i32, %arg1: memref<1xi32, #tpu.memory_space<smem>>, %arg2: memref<16x128xf32, #tpu.memory_space<vmem>>, %arg3: memref<16x128xf32, #tpu.memory_space<vmem>>, %arg4: memref<16x128xf32, #tpu.memory_space<vmem>>, %arg5: memref<16x128xf32, #tpu.memory_space<vmem>>, %arg6: memref<1x8x128xf32, #tpu.memory_space<vmem>>) attributes {dimension_semantics = [#tpu.dimension_semantics<parallel>], iteration_bounds = array<i64: 1>, scalar_prefetch = 1 : i64, scratch_operands = 0 : i64, tpu.core_type = #tpu.core_type<tc>, window_params = [{transform_indices = @transform_0, window_bounds = array<i64: 16, 128>}, {transform_indices = @transform_1, window_bounds = array<i64: 16, 128>}, {transform_indices = @transform_2, window_bounds = array<i64: 16, 128>}, {transform_indices = @transform_3, window_bounds = array<i64: 16, 128>}, {transform_indices = @transform_4, window_bounds = array<i64: 1, 8, 128>}]} {
    %c0 = arith.constant 0 : index
    %0 = memref.load %arg1[%c0] : memref<1xi32, #tpu.memory_space<smem>>
    %c2048_i32 = arith.constant 2048 : i32
    %1 = arith.muli %arg0, %c2048_i32 : i32
    %c2048_i32_0 = arith.constant 2048 : i32
    %2 = arith.addi %1, %c2048_i32_0 : i32
    %3 = arith.cmpi sle, %2, %0 : i32
    %4 = arith.extui %3 : i1 to i32
    %c0_i32 = arith.constant 0 : i32
    %5 = arith.cmpi ne, %4, %c0_i32 : i32
    scf.if %5 {
      %cst = arith.constant 0.000000e+00 : f32
      %9 = vector.broadcast %cst : f32 to vector<8x128xf32>
      %c0_i32_2 = arith.constant 0 : i32
      %c16_i32 = arith.constant 16 : i32
      %10 = arith.muli %c0_i32_2, %c16_i32 : i32
      %11 = tpu.assume_multiple %10, 16 : i32
      %12 = arith.index_cast %11 : i32 to index
      %c0_3 = arith.constant 0 : index
      %13 = vector.load %arg2[%12, %c0_3] : memref<16x128xf32, #tpu.memory_space<vmem>>, vector<16x128xf32>
      %cst_4 = arith.constant 0.000000e+00 : f32
      %14 = vector.broadcast %cst_4 : f32 to vector<16x128xf32>
      %15 = arith.index_cast %11 : i32 to index
      %c0_5 = arith.constant 0 : index
      %16 = vector.load %arg3[%15, %c0_5] : memref<16x128xf32, #tpu.memory_space<vmem>>, vector<16x128xf32>
      %cst_6 = arith.constant 0.000000e+00 : f32
      %17 = vector.broadcast %cst_6 : f32 to vector<16x128xf32>
      %18 = arith.maximumf %16, %17 : vector<16x128xf32>
      %19 = arith.mulf %16, %13 : vector<16x128xf32>
      %20 = arith.subf %18, %19 : vector<16x128xf32>
      %21 = math.absf %16 : vector<16x128xf32>
      %cst_7 = arith.constant 0.000000e+00 : f32
      %22 = vector.broadcast %cst_7 : f32 to vector<16x128xf32>
      %23 = arith.subf %22, %21 : vector<16x128xf32>
      %24 = math.exp %23 : vector<16x128xf32>
      %cst_8 = arith.constant 1.000000e+00 : f32
      %25 = vector.broadcast %cst_8 : f32 to vector<16x128xf32>
      %26 = arith.addf %25, %24 : vector<16x128xf32>
      %27 = math.log %26 : vector<16x128xf32>
      %28 = arith.addf %20, %27 : vector<16x128xf32>
      %cst_9 = arith.constant 0.333333343 : f32
      %29 = vector.broadcast %cst_9 : f32 to vector<16x128xf32>
      %30 = arith.mulf %29, %28 : vector<16x128xf32>
      %31 = arith.addf %14, %30 : vector<16x128xf32>
      %32 = arith.index_cast %11 : i32 to index
      %c0_10 = arith.constant 0 : index
      %33 = vector.load %arg4[%32, %c0_10] : memref<16x128xf32, #tpu.memory_space<vmem>>, vector<16x128xf32>
      %cst_11 = arith.constant 0.000000e+00 : f32
      %34 = vector.broadcast %cst_11 : f32 to vector<16x128xf32>
      %35 = arith.maximumf %33, %34 : vector<16x128xf32>
      %36 = arith.mulf %33, %13 : vector<16x128xf32>
      %37 = arith.subf %35, %36 : vector<16x128xf32>
      %38 = math.absf %33 : vector<16x128xf32>
      %cst_12 = arith.constant 0.000000e+00 : f32
      %39 = vector.broadcast %cst_12 : f32 to vector<16x128xf32>
      %40 = arith.subf %39, %38 : vector<16x128xf32>
      %41 = math.exp %40 : vector<16x128xf32>
      %cst_13 = arith.constant 1.000000e+00 : f32
      %42 = vector.broadcast %cst_13 : f32 to vector<16x128xf32>
      %43 = arith.addf %42, %41 : vector<16x128xf32>
      %44 = math.log %43 : vector<16x128xf32>
      %45 = arith.addf %37, %44 : vector<16x128xf32>
      %cst_14 = arith.constant 0.333333343 : f32
      %46 = vector.broadcast %cst_14 : f32 to vector<16x128xf32>
      %47 = arith.mulf %46, %45 : vector<16x128xf32>
      %48 = arith.addf %31, %47 : vector<16x128xf32>
      %49 = arith.index_cast %11 : i32 to index
      %c0_15 = arith.constant 0 : index
      %50 = vector.load %arg5[%49, %c0_15] : memref<16x128xf32, #tpu.memory_space<vmem>>, vector<16x128xf32>
      %cst_16 = arith.constant 0.000000e+00 : f32
      %51 = vector.broadcast %cst_16 : f32 to vector<16x128xf32>
      %52 = arith.maximumf %50, %51 : vector<16x128xf32>
      %53 = arith.mulf %50, %13 : vector<16x128xf32>
      %54 = arith.subf %52, %53 : vector<16x128xf32>
      %55 = math.absf %50 : vector<16x128xf32>
      %cst_17 = arith.constant 0.000000e+00 : f32
      %56 = vector.broadcast %cst_17 : f32 to vector<16x128xf32>
      %57 = arith.subf %56, %55 : vector<16x128xf32>
      %58 = math.exp %57 : vector<16x128xf32>
      %cst_18 = arith.constant 1.000000e+00 : f32
      %59 = vector.broadcast %cst_18 : f32 to vector<16x128xf32>
      %60 = arith.addf %59, %58 : vector<16x128xf32>
      %61 = math.log %60 : vector<16x128xf32>
      %62 = arith.addf %54, %61 : vector<16x128xf32>
      %cst_19 = arith.constant 1.000000e+00 : f32
      %63 = vector.broadcast %cst_19 : f32 to vector<16x128xf32>
      %64 = arith.mulf %63, %62 : vector<16x128xf32>
      %65 = arith.addf %48, %64 : vector<16x128xf32>
      %66 = vector.shape_cast %65 : vector<16x128xf32> to vector<2x8x128xf32>
      %cst_20 = arith.constant dense<0.000000e+00> : vector<8x128xf32>
      %67 = vector.multi_reduction <add>, %66, %cst_20 [0] : vector<2x8x128xf32> to vector<8x128xf32>
      %68 = arith.addf %9, %67 : vector<8x128xf32>
      %c1_i32 = arith.constant 1 : i32
      %c0_21 = arith.constant 0 : index
      %c0_22 = arith.constant 0 : index
      %c0_23 = arith.constant 0 : index
      %69 = vector.load %arg6[%c0_21, %c0_22, %c0_23] : memref<1x8x128xf32, #tpu.memory_space<vmem>>, vector<1x8x128xf32>
      %70 = vector.shape_cast %69 : vector<1x8x128xf32> to vector<8x128xf32>
      %71 = vector.shape_cast %68 : vector<8x128xf32> to vector<1x8x128xf32>
      tpu.vector_store %arg6[%c0_21, %c0_22, %c0_23], %71 {strides = array<i32>} : memref<1x8x128xf32, #tpu.memory_space<vmem>>, vector<1x8x128xf32>,
    } else {
    }
    %true = arith.constant true
    %6 = arith.xori %3, %true : i1
    %7 = arith.extui %6 : i1 to i32
    %c0_i32_1 = arith.constant 0 : i32
    %8 = arith.cmpi ne, %7, %c0_i32_1 : i32
    scf.if %8 {
      %9 = tpu.iota {dimensions = array<i32: 0>} : vector<16x128xi32>
      %c128_i32 = arith.constant 128 : i32
      %10 = vector.broadcast %c128_i32 : i32 to vector<16x128xi32>
      %11 = arith.muli %9, %10 : vector<16x128xi32>
      %12 = tpu.iota {dimensions = array<i32: 1>} : vector<16x128xi32>
      %13 = arith.addi %11, %12 : vector<16x128xi32>
      %cst = arith.constant 0.000000e+00 : f32
      %14 = vector.broadcast %cst : f32 to vector<8x128xf32>
      %c0_i32_2 = arith.constant 0 : i32
      %c16_i32 = arith.constant 16 : i32
      %15 = arith.muli %c0_i32_2, %c16_i32 : i32
      %16 = tpu.assume_multiple %15, 16 : i32
      %17 = arith.index_cast %16 : i32 to index
      %c0_3 = arith.constant 0 : index
      %18 = vector.load %arg2[%17, %c0_3] : memref<16x128xf32, #tpu.memory_space<vmem>>, vector<16x128xf32>
      %cst_4 = arith.constant 0.000000e+00 : f32
      %19 = vector.broadcast %cst_4 : f32 to vector<16x128xf32>
      %20 = arith.index_cast %16 : i32 to index
      %c0_5 = arith.constant 0 : index
      %21 = vector.load %arg3[%20, %c0_5] : memref<16x128xf32, #tpu.memory_space<vmem>>, vector<16x128xf32>
      %cst_6 = arith.constant 0.000000e+00 : f32
      %22 = vector.broadcast %cst_6 : f32 to vector<16x128xf32>
      %23 = arith.maximumf %21, %22 : vector<16x128xf32>
      %24 = arith.mulf %21, %18 : vector<16x128xf32>
      %25 = arith.subf %23, %24 : vector<16x128xf32>
      %26 = math.absf %21 : vector<16x128xf32>
      %cst_7 = arith.constant 0.000000e+00 : f32
      %27 = vector.broadcast %cst_7 : f32 to vector<16x128xf32>
      %28 = arith.subf %27, %26 : vector<16x128xf32>
      %29 = math.exp %28 : vector<16x128xf32>
      %cst_8 = arith.constant 1.000000e+00 : f32
      %30 = vector.broadcast %cst_8 : f32 to vector<16x128xf32>
      %31 = arith.addf %30, %29 : vector<16x128xf32>
      %32 = math.log %31 : vector<16x128xf32>
      %33 = arith.addf %25, %32 : vector<16x128xf32>
      %cst_9 = arith.constant 0.333333343 : f32
      %34 = vector.broadcast %cst_9 : f32 to vector<16x128xf32>
      %35 = arith.mulf %34, %33 : vector<16x128xf32>
      %36 = arith.addf %19, %35 : vector<16x128xf32>
      %37 = arith.index_cast %16 : i32 to index
      %c0_10 = arith.constant 0 : index
      %38 = vector.load %arg4[%37, %c0_10] : memref<16x128xf32, #tpu.memory_space<vmem>>, vector<16x128xf32>
      %cst_11 = arith.constant 0.000000e+00 : f32
      %39 = vector.broadcast %cst_11 : f32 to vector<16x128xf32>
      %40 = arith.maximumf %38, %39 : vector<16x128xf32>
      %41 = arith.mulf %38, %18 : vector<16x128xf32>
      %42 = arith.subf %40, %41 : vector<16x128xf32>
      %43 = math.absf %38 : vector<16x128xf32>
      %cst_12 = arith.constant 0.000000e+00 : f32
      %44 = vector.broadcast %cst_12 : f32 to vector<16x128xf32>
      %45 = arith.subf %44, %43 : vector<16x128xf32>
      %46 = math.exp %45 : vector<16x128xf32>
      %cst_13 = arith.constant 1.000000e+00 : f32
      %47 = vector.broadcast %cst_13 : f32 to vector<16x128xf32>
      %48 = arith.addf %47, %46 : vector<16x128xf32>
      %49 = math.log %48 : vector<16x128xf32>
      %50 = arith.addf %42, %49 : vector<16x128xf32>
      %cst_14 = arith.constant 0.333333343 : f32
      %51 = vector.broadcast %cst_14 : f32 to vector<16x128xf32>
      %52 = arith.mulf %51, %50 : vector<16x128xf32>
      %53 = arith.addf %36, %52 : vector<16x128xf32>
      %54 = arith.index_cast %16 : i32 to index
      %c0_15 = arith.constant 0 : index
      %55 = vector.load %arg5[%54, %c0_15] : memref<16x128xf32, #tpu.memory_space<vmem>>, vector<16x128xf32>
      %cst_16 = arith.constant 0.000000e+00 : f32
      %56 = vector.broadcast %cst_16 : f32 to vector<16x128xf32>
      %57 = arith.maximumf %55, %56 : vector<16x128xf32>
      %58 = arith.mulf %55, %18 : vector<16x128xf32>
      %59 = arith.subf %57, %58 : vector<16x128xf32>
      %60 = math.absf %55 : vector<16x128xf32>
      %cst_17 = arith.constant 0.000000e+00 : f32
      %61 = vector.broadcast %cst_17 : f32 to vector<16x128xf32>
      %62 = arith.subf %61, %60 : vector<16x128xf32>
      %63 = math.exp %62 : vector<16x128xf32>
      %cst_18 = arith.constant 1.000000e+00 : f32
      %64 = vector.broadcast %cst_18 : f32 to vector<16x128xf32>
      %65 = arith.addf %64, %63 : vector<16x128xf32>
      %66 = math.log %65 : vector<16x128xf32>
      %67 = arith.addf %59, %66 : vector<16x128xf32>
      %cst_19 = arith.constant 1.000000e+00 : f32
      %68 = vector.broadcast %cst_19 : f32 to vector<16x128xf32>
      %69 = arith.mulf %68, %67 : vector<16x128xf32>
      %70 = arith.addf %53, %69 : vector<16x128xf32>
      %c2048_i32_20 = arith.constant 2048 : i32
      %71 = arith.muli %c0_i32_2, %c2048_i32_20 : i32
      %72 = arith.addi %1, %71 : i32
      %73 = vector.broadcast %72 : i32 to vector<16x128xi32>
      %74 = arith.addi %73, %13 : vector<16x128xi32>
      %75 = vector.broadcast %0 : i32 to vector<16x128xi32>
      %76 = arith.cmpi slt, %74, %75 : vector<16x128xi32>
      %cst_21 = arith.constant 0.000000e+00 : f32
      %77 = vector.broadcast %cst_21 : f32 to vector<16x128xf32>
      %78 = arith.select %76, %70, %77 : vector<16x128xi1>, vector<16x128xf32>
      %79 = vector.shape_cast %78 : vector<16x128xf32> to vector<2x8x128xf32>
      %cst_22 = arith.constant dense<0.000000e+00> : vector<8x128xf32>
      %80 = vector.multi_reduction <add>, %79, %cst_22 [0] : vector<2x8x128xf32> to vector<8x128xf32>
      %81 = arith.addf %14, %80 : vector<8x128xf32>
      %c1_i32 = arith.constant 1 : i32
      %c0_23 = arith.constant 0 : index
      %c0_24 = arith.constant 0 : index
      %c0_25 = arith.constant 0 : index
      %82 = vector.load %arg6[%c0_23, %c0_24, %c0_25] : memref<1x8x128xf32, #tpu.memory_space<vmem>>, vector<1x8x128xf32>
      %83 = vector.shape_cast %82 : vector<1x8x128xf32> to vector<8x128xf32>
      %84 = vector.shape_cast %81 : vector<8x128xf32> to vector<1x8x128xf32>
      tpu.vector_store %arg6[%c0_23, %c0_24, %c0_25], %84 {strides = array<i32>} : memref<1x8x128xf32, #tpu.memory_space<vmem>>, vector<1x8x128xf32>,
    } else {
    }
    return
  }
  func.func @transform_0(%arg0: i32, %arg1: memref<1xi32, #tpu.memory_space<smem>>) -> (i32, i32) {
    %c0_i32 = arith.constant 0 : i32
    %c0_i32_0 = arith.constant 0 : i32
    return %arg0, %c0_i32 : i32, i32
  }
  func.func @transform_1(%arg0: i32, %arg1: memref<1xi32, #tpu.memory_space<smem>>) -> (i32, i32) {
    %c0_i32 = arith.constant 0 : i32
    %c0_i32_0 = arith.constant 0 : i32
    return %arg0, %c0_i32 : i32, i32
  }
  func.func @transform_2(%arg0: i32, %arg1: memref<1xi32, #tpu.memory_space<smem>>) -> (i32, i32) {
    %c0_i32 = arith.constant 0 : i32
    %c0_i32_0 = arith.constant 0 : i32
    return %arg0, %c0_i32 : i32, i32
  }
  func.func @transform_3(%arg0: i32, %arg1: memref<1xi32, #tpu.memory_space<smem>>) -> (i32, i32) {
    %c0_i32 = arith.constant 0 : i32
    %c0_i32_0 = arith.constant 0 : i32
    return %arg0, %c0_i32 : i32, i32
  }
  func.func @transform_4(%arg0: i32, %arg1: memref<1xi32, #tpu.memory_space<smem>>) -> (i32, i32, i32) {
    %c0_i32 = arith.constant 0 : i32
    %c0_i32_0 = arith.constant 0 : i32
    %c0_i32_1 = arith.constant 0 : i32
    return %arg0, %c0_i32, %c0_i32_0 : i32, i32, i32
  }
}

</mosaic_0001>

<bundles_post_ra>
// kernel: tpu_custom_call.1
= control target key start
LH: loop header
LB: loop body
LE: loop exit
PB: predicated region body
PF: predicated region fallthrough
CT: control target
= control target key end

     0   :  { %11 = vsyncpa [#allocation5], 0  ;;  %s569_s0 = inlined_call_operand.<no memory space> [shape: s32[1], index: 0, kind: input, shape index: {}]   ;;  %s570_s1 = inlined_call_operand.hbm [shape: f32[16,128], index: 1, kind: input, shape index: {}]   ;;  %s571_s2 = inlined_call_operand.hbm [shape: f32[16,128], index: 2, kind: input, shape index: {}]   ;;  %s572_s3 = inlined_call_operand.hbm [shape: f32[16,128], index: 3, kind: input, shape index: {}]   ;;  %s573_s4 = inlined_call_operand.hbm [shape: f32[16,128], index: 4, kind: input, shape index: {}]   ;;  %s574_s5 = inlined_call_operand.hbm [shape: f32[1,8,128], index: 5, kind: output, shape index: {}]  }
   0x1   :  { %12 = vsyncpa [#allocation8], 0 }
   0x2   :  { %13 = vsyncpa [#allocation11], 0 }
   0x3   :  { %14 = vsyncpa [#allocation6], 0  ;;  %s461_s18 = smov [#allocation7]   ;;  %s462_s20 = smov [#allocation4]  }
   0x4   :  { %s32_s19 = sshll.u32 %s461_s18, 4  ;;  %s20_s21 = sshll.u32 %s462_s20, 4  ;;  %s33_s19 = int_to_ptr.vmem [resolvable:$true] %s32_s19  ;;  %s21_s21 = int_to_ptr.vmem [resolvable:$true] %s20_s21 }
   0x5   :  { %s361_s22 = scalar_lea.vmem %s33_s19, 256  ;;  %p366_p1 = scmp.lt.s32.totalorder %s33_s19, %s33_s19 }
   0x6   :  { %p362_p0 = scmp.ne.s32.totalorder %s33_s19, %s361_s22  ;;  %p367_p2 = scmp.lt.s32.totalorder %s361_s22, %s361_s22 }
   0x8   :  { %p368_p3 = por %p367_p2, %p366_p1 }
   0xa   :  { %p369_p4 = pnand %p368_p3, %p362_p0 }
   0xc   :  { %372 = shalt.err (!%p369_p4)
}
   0xd   :  { %s463_s23 = smov 128   ;;  %s464_s24 = smov 8  }
   0xe   :  { %38 = dma.hbm_to_vmem [thread:$0]  %s571_s2, 256, %s33_s19, [#allocation8], %s463_s23, %s463_s23, %s464_s24  }
   0xf   :  { %s381_s27 = scalar_lea.vmem %s21_s21, 256  ;;  %p386_p6 = scmp.lt.s32.totalorder %s21_s21, %s21_s21 }
  0x10   :  { %p382_p5 = scmp.ne.s32.totalorder %s21_s21, %s381_s27  ;;  %p387_p7 = scmp.lt.s32.totalorder %s381_s27, %s381_s27 }
  0x12   :  { %p388_p8 = por %p387_p7, %p386_p6 }
  0x14   :  { %p389_p9 = pnand %p388_p8, %p382_p5 }
  0x16   :  { %392 = shalt.err (!%p389_p9)
}
  0x17   :  { %26 = dma.hbm_to_vmem [thread:$0]  %s570_s1, 256, %s21_s21, [#allocation5], %s463_s23, %s463_s23, %s464_s24  }
  0x18   :  { %s465_s30 = smov [#allocation9]   ;;  %s466_s7 = smov [#allocation10]  }
  0x19   :  { %s44_s6 = sshll.u32 %s465_s30, 4  ;;  %s56_s8 = sshll.u32 %s466_s7, 4  ;;  %s45_s6 = int_to_ptr.vmem [resolvable:$true] %s44_s6  ;;  %s57_s8 = int_to_ptr.vmem [resolvable:$true] %s56_s8 }
  0x1a   :  { %s401_s2 = scalar_lea.vmem %s45_s6, 256  ;;  %p406_p11 = scmp.lt.s32.totalorder %s45_s6, %s45_s6 }
  0x1b   :  { %p402_p10 = scmp.ne.s32.totalorder %s45_s6, %s401_s2  ;;  %p407_p12 = scmp.lt.s32.totalorder %s401_s2, %s401_s2 }
  0x1d   :  { %p408_p13 = por %p407_p12, %p406_p11 }
  0x1f   :  { %p409_p0 = pnand %p408_p13, %p402_p10 }
  0x21   :  { %412 = shalt.err (!%p409_p0)
}
  0x22   :  { %50 = dma.hbm_to_vmem [thread:$0]  %s572_s3, 256, %s45_s6, [#allocation8], %s463_s23, %s463_s23, %s464_s24  }
  0x23   :  { %s421_s1 = scalar_lea.vmem %s57_s8, 256  ;;  %p426_p2 = scmp.lt.s32.totalorder %s57_s8, %s57_s8 }
  0x24   :  { %p422_p1 = scmp.ne.s32.totalorder %s57_s8, %s421_s1  ;;  %p427_p3 = scmp.lt.s32.totalorder %s421_s1, %s421_s1 }
  0x26   :  { %p428_p4 = por %p427_p3, %p426_p2 }
  0x28   :  { %p429_p5 = pnand %p428_p4, %p422_p1 }
  0x2a   :  { %432 = shalt.err (!%p429_p5)
}
  0x2b   :  { %62 = dma.hbm_to_vmem [thread:$0]  %s573_s4, 256, %s57_s8, [#allocation11], %s463_s23, %s463_s23, %s464_s24  }
  0x2c   :  { %453 = dma.done.wait [#allocation5], 256  }
  0x2d   :  { %454 = vsyncadd [#allocation5], 4294967040 }
  0x2e   :  { %455 = dma.done.wait [#allocation8], 512  }
  0x2f   :  { %456 = vsyncadd [#allocation8], 4294966784 }
  0x30   :  { %457 = dma.done.wait [#allocation11], 256  }
  0x31   :  { %458 = vsyncadd [#allocation11], 4294967040  ;;  %p295_p6 = scmp.lt.s32.totalorder %s569_s0, 2048 }
  0x33   :  { %81 = sbr.rel (%p295_p6) target bundleno = 109 (0x6d), region = 37 }
  0x38   :  { %v84_v0 = vld [vmem:[#allocation7] sm:$0xff]  ;;  %v85_v1 = vld [vmem:[#allocation7 + $0x8] sm:$0xff]  ;;  %v112_v3 = vld [vmem:[#allocation9] sm:$0xff] }
  0x39   :  { %v92_v2 = vand.u32 2147483647, %v84_v0  ;;  %v93_v4 = vand.u32 2147483647, %v85_v1  ;;  %v525_v5 = vld [vmem:[#allocation9 + $0x8] sm:$0xff]  ;;  %v528_v11 = vld [vmem:[#allocation10] sm:$0xff] }
  0x3a   :  { %v120_v8 = vand.u32 2147483647, %v112_v3  ;;  %v121_v10 = vand.u32 2147483647, %v525_v5  ;;  %v530_v12 = vld [vmem:[#allocation10 + $0x8] sm:$0xff]  ;;  %v82_v34 = vld [vmem:[#allocation4] sm:$0xff] }
  0x3b   :  { %v94_v6 = vsub.f32 0.0, %v92_v2  ;;  %v95_v7 = vsub.f32 0.0, %v93_v4  ;;  %v148_v17 = vand.u32 2147483647, %v528_v11  ;;  %v149_v18 = vand.u32 2147483647, %v530_v12 }
  0x3c   :  { %v122_v14 = vsub.f32 0.0, %v120_v8  ;;  %v123_v15 = vsub.f32 0.0, %v121_v10  ;;  %v83_v36 = vld [vmem:[#allocation4 + $0x8] sm:$0xff]  ;;  %v86_v38 = vmax.f32 %v84_v0, 0.0  ;;  %v88_v39 = vmul.f32 %v84_v0, %v82_v34 }
  0x3d   :  { %v96_v9 = vmul.f32 1.442695, %v94_v6  ;;  %v98_v13 = vmul.f32 1.442695, %v95_v7  ;;  %v150_v20 = vsub.f32 0.0, %v148_v17  ;;  %v151_v21 = vsub.f32 0.0, %v149_v18 }
  0x3e   :  { %v124_v16 = vmul.f32 1.442695, %v122_v14  ;;  %v126_v19 = vmul.f32 1.442695, %v123_v15  ;;  %v87_v40 = vmax.f32 %v85_v1, 0.0  ;;  %v89_v41 = vmul.f32 %v85_v1, %v83_v36 }
  0x3f   :  { %305 = vpow2.f32 %v96_v9  ;;  %v152_v22 = vmul.f32 1.442695, %v150_v20  ;;  %v154_v23 = vmul.f32 1.442695, %v151_v21  ;;  %v114_v42 = vmax.f32 %v112_v3, 0.0 }
  0x40   :  { %307 = vpow2.f32 %v98_v13  ;;  %v116_v43 = vmul.f32 %v112_v3, %v82_v34  ;;  %v90_v44 = vsub.f32 %v86_v38, %v88_v39  ;;  %v115_v45 = vmax.f32 %v525_v5, 0.0 }
  0x41   :  { %309 = vpow2.f32 %v124_v16  ;;  %v117_v46 = vmul.f32 %v525_v5, %v83_v36  ;;  %v91_v48 = vsub.f32 %v87_v40, %v89_v41  ;;  %v142_v53 = vmax.f32 %v528_v11, 0.0 }
  0x42   :  { %311 = vpow2.f32 %v126_v19  ;;  %v118_v52 = vsub.f32 %v114_v42, %v116_v43  ;;  %v144_v54 = vmul.f32 %v528_v11, %v82_v34  ;;  %v143_v58 = vmax.f32 %v530_v12, 0.0 }
  0x43   :  { %313 = vpow2.f32 %v152_v22  ;;  %v119_v57 = vsub.f32 %v115_v45, %v117_v46  ;;  %v145_v59 = vmul.f32 %v530_v12, %v83_v36 }
  0x44   :  { %315 = vpow2.f32 %v154_v23  ;;  %v146_v2 = vsub.f32 %v142_v53, %v144_v54 }
  0x45   :  { %v147_v6 = vsub.f32 %v143_v58, %v145_v59 }
  0x4c   :  { %v306_v24 = vpop.eup %305 }
  0x4d   :  { %v308_v25 = vpop.eup %307  ;;  %v100_v26 = vadd.f32 1.0, %v306_v24 }
  0x4e   :  { %v101_v27 = vadd.f32 1.0, %v308_v25  ;;  %v310_v28 = vpop.eup %309 }
  0x4f   :  { %317 = vlog2.f32 %v100_v26  ;;  %v312_v29 = vpop.eup %311  ;;  %v128_v30 = vadd.f32 1.0, %v310_v28 }
  0x50   :  { %319 = vlog2.f32 %v101_v27  ;;  %v129_v31 = vadd.f32 1.0, %v312_v29  ;;  %v314_v32 = vpop.eup %313 }
  0x51   :  { %321 = vlog2.f32 %v128_v30  ;;  %v316_v33 = vpop.eup %315  ;;  %v156_v35 = vadd.f32 1.0, %v314_v32 }
  0x52   :  { %323 = vlog2.f32 %v129_v31  ;;  %v157_v37 = vadd.f32 1.0, %v316_v33 }
  0x53   :  { %325 = vlog2.f32 %v156_v35 }
  0x54   :  { %327 = vlog2.f32 %v157_v37 }
  0x5c   :  { %v318_v47 = vpop.eup %317 }
  0x5d   :  { %v320_v49 = vpop.eup %319  ;;  %v103_v50 = vmul.f32 0.6931472, %v318_v47 }
  0x5e   :  { %v105_v51 = vmul.f32 0.6931472, %v320_v49  ;;  %v322_v55 = vpop.eup %321 }
  0x5f   :  { %v106_v56 = vadd.f32 %v103_v50, %v90_v44  ;;  %v324_v60 = vpop.eup %323  ;;  %v131_v62 = vmul.f32 0.6931472, %v322_v55 }
  0x60   :  { %v107_v61 = vadd.f32 %v105_v51, %v91_v48  ;;  %v133_v63 = vmul.f32 0.6931472, %v324_v60  ;;  %v326_v3 = vpop.eup %325 }
  0x61   :  { %v108_v0 = vmul.f32 0.33333334, %v106_v56  ;;  %v134_v1 = vadd.f32 %v131_v62, %v118_v52  ;;  %v328_v7 = vpop.eup %327  ;;  %v159_v9 = vmul.f32 0.6931472, %v326_v3 }
  0x62   :  { %v109_v4 = vmul.f32 0.33333334, %v107_v61  ;;  %v135_v5 = vadd.f32 %v133_v63, %v119_v57  ;;  %v161_v11 = vmul.f32 0.6931472, %v328_v7 }
  0x63   :  { %v136_v8 = vmul.f32 0.33333334, %v134_v1  ;;  %v162_v14 = vadd.f32 %v159_v9, %v146_v2 }
  0x64   :  { %v137_v10 = vmul.f32 0.33333334, %v135_v5  ;;  %v163_v12 = vadd.f32 %v161_v11, %v147_v6 }
  0x65   :  { %v138_v13 = vadd.f32 %v136_v8, %v108_v0 }
  0x66   :  { %v139_v15 = vadd.f32 %v137_v10, %v109_v4 }
  0x67   :  { %v164_v16 = vadd.f32 %v162_v14, %v138_v13 }
  0x68   :  { %v165_v17 = vadd.f32 %v163_v12, %v139_v15 }
  0x6a   :  { %v166_v18 = vadd.f32 %v165_v17, %v164_v16 }
  0x6c   :  { %168 = vst [vmem:[#allocation12] sm:$0xff] %v166_v18 }
  0x6d PF:  { %p297_p7 = scmp.ge.s32.totalorder %s569_s0, 2048 }
  0x6f   :  { %172 = sbr.rel (%p297_p7) target bundleno = 170 (0xaa), region = 41 }
  0x74   :  { %v184_v19 = vld [vmem:[#allocation7] sm:$0xff]  ;;  %v185_v20 = vld [vmem:[#allocation7 + $0x8] sm:$0xff]  ;;  %v543_v24 = vld [vmem:[#allocation9] sm:$0xff]  ;;  %v173_v54 = vlaneseq }
  0x75   :  { %v192_v21 = vand.u32 2147483647, %v184_v19  ;;  %v193_v22 = vand.u32 2147483647, %v185_v20  ;;  %v545_v25 = vld [vmem:[#allocation9 + $0x8] sm:$0xff]  ;;  %v549_v31 = vld [vmem:[#allocation10] sm:$0xff] }
  0x76   :  { %v220_v28 = vand.u32 2147483647, %v543_v24  ;;  %v221_v29 = vand.u32 2147483647, %v545_v25  ;;  %v551_v34 = vld [vmem:[#allocation10 + $0x8] sm:$0xff]  ;;  %v182_v52 = vld [vmem:[#allocation4] sm:$0xff] }
  0x77   :  { %v194_v23 = vsub.f32 0.0, %v192_v21  ;;  %v195_v26 = vsub.f32 0.0, %v193_v22  ;;  %v248_v37 = vand.u32 2147483647, %v549_v31  ;;  %v249_v38 = vand.u32 2147483647, %v551_v34 }
  0x78   :  { %v222_v32 = vsub.f32 0.0, %v220_v28  ;;  %v223_v33 = vsub.f32 0.0, %v221_v29  ;;  %v183_v55 = vld [vmem:[#allocation4 + $0x8] sm:$0xff]  ;;  %v186_v58 = vmax.f32 %v184_v19, 0.0  ;;  %v188_v59 = vmul.f32 %v184_v19, %v182_v52 }
  0x79   :  { %v196_v27 = vmul.f32 1.442695, %v194_v23  ;;  %v198_v30 = vmul.f32 1.442695, %v195_v26  ;;  %v250_v39 = vsub.f32 0.0, %v248_v37  ;;  %v251_v40 = vsub.f32 0.0, %v249_v38 }
  0x7a   :  { %v224_v35 = vmul.f32 1.442695, %v222_v32  ;;  %v226_v36 = vmul.f32 1.442695, %v223_v33  ;;  %v187_v60 = vmax.f32 %v185_v20, 0.0  ;;  %v189_v61 = vmul.f32 %v185_v20, %v183_v55 }
  0x7b   :  { %329 = vpow2.f32 %v196_v27  ;;  %v252_v41 = vmul.f32 1.442695, %v250_v39  ;;  %v254_v42 = vmul.f32 1.442695, %v251_v40  ;;  %v174_v62 = vshrl.u32 %v173_v54, 7 }
  0x7c   :  { %331 = vpow2.f32 %v198_v30  ;;  %v190_v0 = vsub.f32 %v186_v58, %v188_v59  ;;  %v214_v1 = vmax.f32 %v543_v24, 0.0  ;;  %v216_v2 = vmul.f32 %v543_v24, %v182_v52 }
  0x7d   :  { %333 = vpow2.f32 %v224_v35  ;;  %v191_v3 = vsub.f32 %v187_v60, %v189_v61  ;;  %v215_v5 = vmax.f32 %v545_v25, 0.0  ;;  %v217_v6 = vmul.f32 %v545_v25, %v183_v55 }
  0x7e   :  { %335 = vpow2.f32 %v226_v36  ;;  %v175_v8 = vadd.s32 8, %v174_v62  ;;  %v176_v9 = vmul.u32 128, %v174_v62  ;;  %v179_v10 = vand.u32 127, %v173_v54 }
  0x7f   :  { %337 = vpow2.f32 %v252_v41  ;;  %v218_v14 = vsub.f32 %v214_v1, %v216_v2  ;;  %v242_v15 = vmax.f32 %v549_v31, 0.0  ;;  %v244_v12 = vmul.f32 %v549_v31, %v182_v52 }
  0x80   :  { %339 = vpow2.f32 %v254_v42  ;;  %v219_v18 = vsub.f32 %v215_v5, %v217_v6  ;;  %v243_v19 = vmax.f32 %v551_v34, 0.0  ;;  %v245_v20 = vmul.f32 %v551_v34, %v183_v55 }
  0x81   :  { %v177_v22 = vmul.u32 128, %v175_v8  ;;  %v246_v27 = vsub.f32 %v242_v15, %v244_v12  ;;  %v180_v29 = vadd.s32 %v179_v10, %v176_v9  ;;  %v269_v34 = vstv %s569_s0 }
  0x82   :  { %v247_v33 = vsub.f32 %v243_v19, %v245_v20 }
  0x83   :  { %v181_v35 = vadd.s32 %v179_v10, %v177_v22  ;;  %vm270_vm0 = vcmp.lt.s32.totalorder %v180_v29, %v269_v34 }
  0x85   :  { %vm271_vm1 = vcmp.lt.s32.totalorder %v181_v35, %v269_v34 }
  0x88   :  { %v330_v43 = vpop.eup %329 }
  0x89   :  { %v200_v44 = vadd.f32 1.0, %v330_v43  ;;  %v332_v45 = vpop.eup %331 }
  0x8a   :  { %v201_v46 = vadd.f32 1.0, %v332_v45  ;;  %v334_v47 = vpop.eup %333 }
  0x8b   :  { %341 = vlog2.f32 %v200_v44  ;;  %v336_v48 = vpop.eup %335  ;;  %v228_v49 = vadd.f32 1.0, %v334_v47 }
  0x8c   :  { %343 = vlog2.f32 %v201_v46  ;;  %v229_v50 = vadd.f32 1.0, %v336_v48  ;;  %v338_v51 = vpop.eup %337 }
  0x8d   :  { %345 = vlog2.f32 %v228_v49  ;;  %v340_v53 = vpop.eup %339  ;;  %v256_v56 = vadd.f32 1.0, %v338_v51 }
  0x8e   :  { %347 = vlog2.f32 %v229_v50  ;;  %v257_v57 = vadd.f32 1.0, %v340_v53 }
  0x8f   :  { %349 = vlog2.f32 %v256_v56 }
  0x90   :  { %351 = vlog2.f32 %v257_v57 }
  0x98   :  { %v342_v63 = vpop.eup %341 }
  0x99   :  { %v203_v4 = vmul.f32 0.6931472, %v342_v63  ;;  %v344_v7 = vpop.eup %343 }
  0x9a   :  { %v205_v11 = vmul.f32 0.6931472, %v344_v7  ;;  %v346_v16 = vpop.eup %345 }
  0x9b   :  { %v206_v13 = vadd.f32 %v203_v4, %v190_v0  ;;  %v348_v21 = vpop.eup %347  ;;  %v231_v23 = vmul.f32 0.6931472, %v346_v16 }
  0x9c   :  { %v207_v17 = vadd.f32 %v205_v11, %v191_v3  ;;  %v233_v24 = vmul.f32 0.6931472, %v348_v21  ;;  %v350_v28 = vpop.eup %349 }
  0x9d   :  { %v208_v25 = vmul.f32 0.33333334, %v206_v13  ;;  %v234_v26 = vadd.f32 %v231_v23, %v218_v14  ;;  %v352_v31 = vpop.eup %351  ;;  %v259_v37 = vmul.f32 0.6931472, %v350_v28 }
  0x9e   :  { %v209_v30 = vmul.f32 0.33333334, %v207_v17  ;;  %v235_v32 = vadd.f32 %v233_v24, %v219_v18  ;;  %v261_v39 = vmul.f32 0.6931472, %v352_v31 }
  0x9f   :  { %v236_v36 = vmul.f32 0.33333334, %v234_v26  ;;  %v262_v41 = vadd.f32 %v259_v37, %v246_v27 }
  0xa0   :  { %v237_v38 = vmul.f32 0.33333334, %v235_v32  ;;  %v263_v43 = vadd.f32 %v261_v39, %v247_v33 }
  0xa1   :  { %v238_v40 = vadd.f32 %v236_v36, %v208_v25 }
  0xa2   :  { %v239_v42 = vadd.f32 %v237_v38, %v209_v30 }
  0xa3   :  { %v264_v44 = vadd.f32 %v262_v41, %v238_v40 }
  0xa4   :  { %v265_v45 = vadd.f32 %v263_v43, %v239_v42 }
  0xa5   :  { %v272_v46 = vsel %vm270_vm0, %v264_v44, 0.0 }
  0xa6   :  { %v273_v47 = vsel %vm271_vm1, %v265_v45, 0.0 }
  0xa7   :  { %v274_v48 = vadd.f32 %v273_v47, %v272_v46 }
  0xa9   :  { %276 = vst [vmem:[#allocation12] sm:$0xff] %v274_v48 }
  0xaa PF:  { %s467_s17 = smov [#allocation12]  }
  0xab   :  { %s283_s18 = sshll.u32 %s467_s17, 4  ;;  %s284_s18 = int_to_ptr.vmem [resolvable:$true] %s283_s18 }
  0xac   :  { %s433_s19 = scalar_lea.vmem %s284_s18, 128  ;;  %p438_p9 = scmp.lt.s32.totalorder %s284_s18, %s284_s18 }
  0xad   :  { %p434_p8 = scmp.ne.s32.totalorder %s284_s18, %s433_s19  ;;  %p439_p10 = scmp.lt.s32.totalorder %s433_s19, %s433_s19 }
  0xaf   :  { %p440_p11 = por %p439_p10, %p438_p9 }
  0xb1   :  { %p441_p12 = pnand %p440_p11, %p434_p8 }
  0xb3   :  { %444 = shalt.err (!%p441_p12)
}
  0xb4   :  { %286 = dma.vmem_to_hbm [thread:$0]  %s284_s18, 128, %s574_s5, [#allocation6]  }
  0xb5   :  { %459 = dma.done.wait [#allocation6], 128  }
  0xb6   :  { %460 = vsyncadd [#allocation6], 4294967168 }
  0xb7   :  { %290 = vsyncpa [#allocation5], 1 }
  0xb8   :  { %291 = vsyncpa [#allocation8], 1 }
  0xb9   :  { %292 = vsyncpa [#allocation11], 1 }
  0xba   :  { %293 = vsyncpa [#allocation6], 1 }

</bundles_post_ra>
